<compile_context>
chip_gen: v7x
topology: tpu7x:2x2x1
jax: 0.10.0
libtpu: 0.0.40
codegen_flags: <defaults>
</compile_context>

<pallas_src>
import functools

import jax
import jax.numpy as jnp
import numpy as np
from jax.experimental import pallas as pl
from jax.experimental.pallas import tpu as pltpu


def _mlp_kernel(xt_ref, w1_ref, b1_ref, w2_ref, b2_ref, w3_ref, b3_ref, o_ref,
                *, matmul_dtype, precision):
    # xt_ref: (F, TB)  -- batch on the 128-lane axis (feature-major)
    # w1:(H,F)  b1:(H,1)  w2:(H,H)  b2:(H,1)  w3:(C,H)  b3:(C,1)  (PyTorch (out,in))
    xt = xt_ref[...]
    w1 = w1_ref[...]
    in_features = xt.shape[0]

    # ---- Layer 1: Linear(F -> H) + ReLU on the VPU (K=F=2 would waste an MXU push).
    # Static unroll over the 2 input features; each (H,1)x(1,TB) broadcast FMA is a
    # plain VPU pass.  (A stride-0 sublane-broadcast load of the x rows would shave
    # a few % more once compute dominates; kept as the proven broadcast form.)
    h1 = b1_ref[...]                                   # (H, 1) broadcasts over TB
    for f in range(in_features):
        h1 = h1 + w1[:, f:f + 1] * xt[f:f + 1, :]      # (H,1) * (1,TB) -> (H,TB)
    h1 = jnp.maximum(h1, 0.0)                          # (H, TB)

    def mm(w, h):
        if matmul_dtype is not None:                   # optional bf16 MXU operands
            w = w.astype(matmul_dtype)
            h = h.astype(matmul_dtype)
        return jnp.dot(w, h, preferred_element_type=jnp.float32, precision=precision)

    # ---- Layer 2: Linear(H -> H) + ReLU on the MXU, f32 accumulation ----
    h2 = jnp.maximum(mm(w2_ref[...], h1) + b2_ref[...], 0.0)   # (H, TB)

    # ---- Layer 3: Linear(H -> C) logits; lane-dense (C, TB) store ----
    o_ref[...] = mm(w3_ref[...], h2) + b3_ref[...]


def landmark_classifier_forward_t(xt, params, *, tile_b=8192, matmul_dtype=None,
                                  precision=None):
    """Feature-major fused MLP forward (no layout plumbing at all).

    xt:      (input_size, B) float32  -- batch on the last (lane) axis
    params:  PyTorch-native layout: w1 (H,F), b1 (H,1), w2 (H,H), b2 (H,1),
             w3 (C,H), b3 (C,1), all float32.
    returns: (num_classes, B) float32 logits (feature-major).
    """
    F, B = xt.shape
    H = params["w2"].shape[0]
    C = params["w3"].shape[0]

    if B <= tile_b:
        tb = B                                   # single block; any B is a legal block
    else:
        assert tile_b % 128 == 0, "tile_b must be a multiple of 128 when gridding"
        tb = tile_b
    grid = (pl.cdiv(B, tb),)                     # ragged tail handled by Pallas masking

    def const2d(shape):
        # Same block every grid step -> weights/biases stay resident in VMEM.
        return pl.BlockSpec(shape, lambda i: (0, 0))

    # Only needed if someone sweeps tiles beyond 8192 (v5e default scoped VMEM is
    # 16 MiB); at the default tile the footprint is ~7-8 MB and fits everywhere.
    vmem_limit = None
    if tb > 8192:
        vmem_limit = int(4 * tb * (2 * 2 * 8 + 4 * H)) + (8 << 20)

    kernel = functools.partial(_mlp_kernel, matmul_dtype=matmul_dtype,
                               precision=precision)

    return pl.pallas_call(
        kernel,
        out_shape=jax.ShapeDtypeStruct((C, B), jnp.float32),
        grid=grid,
        in_specs=[
            pl.BlockSpec((F, tb), lambda i: (0, i)),   # activations, pipelined per tile
            const2d((H, F)), const2d((H, 1)),          # W1, b1
            const2d((H, H)), const2d((H, 1)),          # W2, b2
            const2d((C, H)), const2d((C, 1)),          # W3, b3
        ],
        out_specs=pl.BlockSpec((C, tb), lambda i: (0, i)),
        compiler_params=pltpu.CompilerParams(
            dimension_semantics=("parallel",),         # shard batch grid across TCs (v7x)
            vmem_limit_bytes=vmem_limit,
        ),
    )(xt, params["w1"], params["b1"], params["w2"], params["b2"],
      params["w3"], params["b3"])


def landmark_classifier_forward(x, params, *, tile_b=8192, matmul_dtype=None,
                                precision=None):
    """Module-compatible forward: x (B, input_size) -> logits (B, num_classes).

    The two transposes below are the only layout ops; callers that can keep a
    feature-major layout should use `landmark_classifier_forward_t` directly and
    pay zero plumbing.
    """
    out_t = landmark_classifier_forward_t(x.T, params, tile_b=tile_b,
                                          matmul_dtype=matmul_dtype,
                                          precision=precision)
    return out_t.T


def init_params(key, input_size=2, hidden_size=64, num_classes=2):
    """PyTorch nn.Linear default init: U(-1/sqrt(fan_in), 1/sqrt(fan_in)),
    stored in PyTorch-native (out_features, in_features) layout; biases as (out, 1)."""
    keys = jax.random.split(key, 6)

    def uniform(k, shape, fan_in):
        bound = 1.0 / np.sqrt(fan_in)
        return jax.random.uniform(k, shape, jnp.float32, -bound, bound)

    return {
        "w1": uniform(keys[0], (hidden_size, input_size), input_size),
        "b1": uniform(keys[1], (hidden_size, 1), input_size),
        "w2": uniform(keys[2], (hidden_size, hidden_size), hidden_size),
        "b2": uniform(keys[3], (hidden_size, 1), hidden_size),
        "w3": uniform(keys[4], (num_classes, hidden_size), hidden_size),
        "b3": uniform(keys[5], (num_classes, 1), hidden_size),
    }


def reference_forward(x, p):
    h1 = jnp.maximum(x @ p["w1"].T + p["b1"].T, 0.0)
    h2 = jnp.maximum(h1 @ p["w2"].T + p["b2"].T, 0.0)
    return h2 @ p["w3"].T + p["b3"].T


if __name__ == "__main__":
    key = jax.random.PRNGKey(0)
    k_params, k_x1, k_x2 = jax.random.split(key, 3)

    input_size, hidden_size, num_classes = 2, 64, 2
    params = init_params(k_params, input_size, hidden_size, num_classes)

    # 1) Small demo batch -> single-tile path (default tile_b=8192).
    batch = 256
    x = jax.random.normal(k_x1, (batch, input_size), dtype=jnp.float32)
    out = jax.block_until_ready(landmark_classifier_forward(x, params))
    ref = jax.block_until_ready(reference_forward(x, params))
    np.testing.assert_allclose(np.asarray(out), np.asarray(ref), rtol=1e-5, atol=1e-5)
    assert out.shape == (batch, num_classes)

    # 2) Gridded path with a ragged tail and no explicit pad: B=300, tile_b=128 -> grid=(3,).
    batch2 = 300
    x2 = jax.random.normal(k_x2, (batch2, input_size), dtype=jnp.float32)
    out2 = jax.block_until_ready(landmark_classifier_forward(x2, params, tile_b=128))
    ref2 = jax.block_until_ready(reference_forward(x2, params))
    np.testing.assert_allclose(np.asarray(out2), np.asarray(ref2), rtol=1e-5, atol=1e-5)
    assert out2.shape == (batch2, num_classes)

    print("KERNEL_OK")
</pallas_src>

<mosaic_0001>
module attributes {stable_mosaic.version = 11 : i64} {
  func.func @_mlp_kernel(%arg0: i32, %arg1: memref<2x256xf32, #tpu.memory_space<vmem>>, %arg2: memref<64x2xf32, #tpu.memory_space<vmem>>, %arg3: memref<64x1xf32, #tpu.memory_space<vmem>>, %arg4: memref<64x64xf32, #tpu.memory_space<vmem>>, %arg5: memref<64x1xf32, #tpu.memory_space<vmem>>, %arg6: memref<2x64xf32, #tpu.memory_space<vmem>>, %arg7: memref<2x1xf32, #tpu.memory_space<vmem>>, %arg8: memref<2x256xf32, #tpu.memory_space<vmem>>) attributes {dimension_semantics = [#tpu.dimension_semantics<parallel>], iteration_bounds = array<i64: 1>, scalar_prefetch = 0 : i64, scratch_operands = 0 : i64, tpu.core_type = #tpu.core_type<tc>, window_params = [{transform_indices = @transform_0, window_bounds = array<i64: 2, 256>}, {pipeline_mode = #tpu.pipeline_mode<synchronous>, transform_indices = @transform_1, window_bounds = array<i64: 64, 2>}, {pipeline_mode = #tpu.pipeline_mode<synchronous>, transform_indices = @transform_2, window_bounds = array<i64: 64, 1>}, {pipeline_mode = #tpu.pipeline_mode<synchronous>, transform_indices = @transform_3, window_bounds = array<i64: 64, 64>}, {pipeline_mode = #tpu.pipeline_mode<synchronous>, transform_indices = @transform_4, window_bounds = array<i64: 64, 1>}, {pipeline_mode = #tpu.pipeline_mode<synchronous>, transform_indices = @transform_5, window_bounds = array<i64: 2, 64>}, {pipeline_mode = #tpu.pipeline_mode<synchronous>, transform_indices = @transform_6, window_bounds = array<i64: 2, 1>}, {transform_indices = @transform_7, window_bounds = array<i64: 2, 256>}]} {
    %c0 = arith.constant 0 : index
    %c0_0 = arith.constant 0 : index
    %0 = vector.load %arg1[%c0, %c0_0] : memref<2x256xf32, #tpu.memory_space<vmem>>, vector<2x256xf32>
    %c0_1 = arith.constant 0 : index
    %c0_2 = arith.constant 0 : index
    %1 = vector.load %arg2[%c0_1, %c0_2] : memref<64x2xf32, #tpu.memory_space<vmem>>, vector<64x2xf32>
    %c0_3 = arith.constant 0 : index
    %c0_4 = arith.constant 0 : index
    %2 = vector.load %arg3[%c0_3, %c0_4] : memref<64x1xf32, #tpu.memory_space<vmem>>, vector<64x1xf32>
    %3 = vector.extract_strided_slice %1 {offsets = [0, 0], sizes = [64, 1], strides = [1, 1]} : vector<64x2xf32> to vector<64x1xf32>
    %4 = vector.extract_strided_slice %0 {offsets = [0, 0], sizes = [1, 256], strides = [1, 1]} : vector<2x256xf32> to vector<1x256xf32>
    %5 = vector.broadcast %3 : vector<64x1xf32> to vector<64x256xf32>
    %6 = vector.broadcast %4 : vector<1x256xf32> to vector<64x256xf32>
    %7 = arith.mulf %5, %6 : vector<64x256xf32>
    %8 = vector.broadcast %2 : vector<64x1xf32> to vector<64x256xf32>
    %9 = arith.addf %8, %7 : vector<64x256xf32>
    %10 = vector.extract_strided_slice %1 {offsets = [0, 1], sizes = [64, 1], strides = [1, 1]} : vector<64x2xf32> to vector<64x1xf32>
    %11 = vector.extract_strided_slice %0 {offsets = [1, 0], sizes = [1, 256], strides = [1, 1]} : vector<2x256xf32> to vector<1x256xf32>
    %12 = vector.broadcast %10 : vector<64x1xf32> to vector<64x256xf32>
    %13 = vector.broadcast %11 : vector<1x256xf32> to vector<64x256xf32>
    %14 = arith.mulf %12, %13 : vector<64x256xf32>
    %15 = arith.addf %9, %14 : vector<64x256xf32>
    %cst = arith.constant 0.000000e+00 : f32
    %16 = vector.broadcast %cst : f32 to vector<64x256xf32>
    %17 = arith.maximumf %15, %16 : vector<64x256xf32>
    %c0_5 = arith.constant 0 : index
    %c0_6 = arith.constant 0 : index
    %18 = vector.load %arg4[%c0_5, %c0_6] : memref<64x64xf32, #tpu.memory_space<vmem>>, vector<64x64xf32>
    %cst_7 = arith.constant dense<0.000000e+00> : vector<64x256xf32>
    %19 = tpu.matmul %18, %17, %cst_7 {dimension_numbers = #tpu.dot_dimension_numbers<[1], [0], [0], [1], [0, 0, 1, 1], [], []>} : vector<64x64xf32>, vector<64x256xf32>, vector<64x256xf32> -> vector<64x256xf32>
    %c0_8 = arith.constant 0 : index
    %c0_9 = arith.constant 0 : index
    %20 = vector.load %arg5[%c0_8, %c0_9] : memref<64x1xf32, #tpu.memory_space<vmem>>, vector<64x1xf32>
    %21 = vector.broadcast %20 : vector<64x1xf32> to vector<64x256xf32>
    %22 = arith.addf %19, %21 : vector<64x256xf32>
    %cst_10 = arith.constant 0.000000e+00 : f32
    %23 = vector.broadcast %cst_10 : f32 to vector<64x256xf32>
    %24 = arith.maximumf %22, %23 : vector<64x256xf32>
    %c0_11 = arith.constant 0 : index
    %c0_12 = arith.constant 0 : index
    %25 = vector.load %arg6[%c0_11, %c0_12] : memref<2x64xf32, #tpu.memory_space<vmem>>, vector<2x64xf32>
    %cst_13 = arith.constant dense<0.000000e+00> : vector<2x256xf32>
    %26 = tpu.matmul %25, %24, %cst_13 {dimension_numbers = #tpu.dot_dimension_numbers<[1], [0], [0], [1], [0, 0, 1, 1], [], []>} : vector<2x64xf32>, vector<64x256xf32>, vector<2x256xf32> -> vector<2x256xf32>
    %c0_14 = arith.constant 0 : index
    %c0_15 = arith.constant 0 : index
    %27 = vector.load %arg7[%c0_14, %c0_15] : memref<2x1xf32, #tpu.memory_space<vmem>>, vector<2x1xf32>
    %28 = vector.broadcast %27 : vector<2x1xf32> to vector<2x256xf32>
    %29 = arith.addf %26, %28 : vector<2x256xf32>
    %c0_16 = arith.constant 0 : index
    %c0_17 = arith.constant 0 : index
    %30 = vector.load %arg8[%c0_16, %c0_17] : memref<2x256xf32, #tpu.memory_space<vmem>>, vector<2x256xf32>
    tpu.vector_store %arg8[%c0_16, %c0_17], %29 {strides = array<i32>} : memref<2x256xf32, #tpu.memory_space<vmem>>, vector<2x256xf32>,
    return
  }
  func.func @transform_0(%arg0: i32) -> (i32, i32) {
    %c0_i32 = arith.constant 0 : i32
    %c0_i32_0 = arith.constant 0 : i32
    return %c0_i32, %arg0 : i32, i32
  }
  func.func @transform_1(%arg0: i32) -> (i32, i32) {
    %c0_i32 = arith.constant 0 : i32
    %c0_i32_0 = arith.constant 0 : i32
    %c0_i32_1 = arith.constant 0 : i32
    return %c0_i32, %c0_i32_0 : i32, i32
  }
  func.func @transform_2(%arg0: i32) -> (i32, i32) {
    %c0_i32 = arith.constant 0 : i32
    %c0_i32_0 = arith.constant 0 : i32
    %c0_i32_1 = arith.constant 0 : i32
    return %c0_i32, %c0_i32_0 : i32, i32
  }
  func.func @transform_3(%arg0: i32) -> (i32, i32) {
    %c0_i32 = arith.constant 0 : i32
    %c0_i32_0 = arith.constant 0 : i32
    %c0_i32_1 = arith.constant 0 : i32
    return %c0_i32, %c0_i32_0 : i32, i32
  }
  func.func @transform_4(%arg0: i32) -> (i32, i32) {
    %c0_i32 = arith.constant 0 : i32
    %c0_i32_0 = arith.constant 0 : i32
    %c0_i32_1 = arith.constant 0 : i32
    return %c0_i32, %c0_i32_0 : i32, i32
  }
  func.func @transform_5(%arg0: i32) -> (i32, i32) {
    %c0_i32 = arith.constant 0 : i32
    %c0_i32_0 = arith.constant 0 : i32
    %c0_i32_1 = arith.constant 0 : i32
    return %c0_i32, %c0_i32_0 : i32, i32
  }
  func.func @transform_6(%arg0: i32) -> (i32, i32) {
    %c0_i32 = arith.constant 0 : i32
    %c0_i32_0 = arith.constant 0 : i32
    %c0_i32_1 = arith.constant 0 : i32
    return %c0_i32, %c0_i32_0 : i32, i32
  }
  func.func @transform_7(%arg0: i32) -> (i32, i32) {
    %c0_i32 = arith.constant 0 : i32
    %c0_i32_0 = arith.constant 0 : i32
    return %c0_i32, %arg0 : i32, i32
  }
}

</mosaic_0001>

<bundles_post_ra>
// kernel: tpu_custom_call.1
= control target key start
LH: loop header
LB: loop body
LE: loop exit
PB: predicated region body
PF: predicated region fallthrough
CT: control target
= control target key end

     0   :  { %v672_v2 = vmov 0   ;;  %s899_s0 = inlined_call_operand.vmem [shape: f32[2,256], index: 0, kind: input, shape index: {}]   ;;  %s900_s1 = inlined_call_operand.vmem [shape: f32[64,2], index: 1, kind: input, shape index: {}]   ;;  %s901_s2 = inlined_call_operand.vmem [shape: f32[64,1], index: 2, kind: input, shape index: {}]   ;;  %s902_s3 = inlined_call_operand.vmem [shape: f32[64,64], index: 3, kind: input, shape index: {}]   ;;  %s903_s4 = inlined_call_operand.vmem [shape: f32[64,1], index: 4, kind: input, shape index: {}]   ;;  %s904_s5 = inlined_call_operand.vmem [shape: f32[2,64], index: 5, kind: input, shape index: {}]   ;;  %s905_s6 = inlined_call_operand.vmem [shape: f32[2,1], index: 6, kind: input, shape index: {}]   ;;  %s906_s7 = inlined_call_operand.hbm [shape: f32[2,256], index: 7, kind: output, shape index: {}]  }
   0x1   :  { %v36_v0 = vld [vmem:[%s901_s2] sm:$0xff]  ;;  %637 = vset.pattern.permute.xlu1 %v672_v2  ;;  %636 = vset.pattern.permute.xlu0 %v672_v2  ;;  %v37_v3 = vld [vmem:[%s901_s2 + $0x8] sm:$0xff] }
   0x2   :  { %v28_v1 = vld [vmem:[%s900_s1] sm:$0xff]  ;;  %121 = vperm.xlu1 %637, %v36_v0   ;;  %v29_v4 = vld [vmem:[%s900_s1 + $0x8] sm:$0xff] }
   0x3   :  { %46 = vperm.xlu0 %636, %v28_v1  }
   0x6   :  { %126 = vperm.xlu1 %637, %v37_v3  }
   0x7   :  { %51 = vperm.xlu0 %636, %v29_v4  }
   0x8   :  { %12 = vsyncpa [#allocation3], 0  ;;  %v31_v5 = vld [vmem:[%s900_s1 + $0x18] sm:$0xff]  ;;  %v673_v6 = vmov 1   ;;  %v33_v7 = vld [vmem:[%s900_s1 + $0x28] sm:$0xff]  ;;  %v674_v18 = vmov 0.0   ;;  %v85_v28 = vlaneseq }
   0x9   :  { %v30_v8 = vld [vmem:[%s900_s1 + $0x10] sm:$0xff]  ;;  %v35_v9 = vld [vmem:[%s900_s1 + $0x38] sm:$0xff]  ;;  %v32_v12 = vld [vmem:[%s900_s1 + $0x20] sm:$0xff]  ;;  %418 = vmatprep.mubr.f32.mxu0 %v674_v18  ;;  %557 = vmatprep.mubr.f32.mxu1 %v674_v18  ;;  %vm329_vm0 = vcmask 523264   ;;  %s675_s17 = smov [#allocation2]  }
   0xa   :  { %638 = vset.pattern.permute.xlu1 %v673_v6  ;;  %v38_v10 = vld [vmem:[%s901_s2 + $0x10] sm:$0xff]  ;;  %v39_v11 = vld [vmem:[%s901_s2 + $0x18] sm:$0xff]  ;;  %v40_v14 = vld [vmem:[%s901_s2 + $0x20] sm:$0xff]  ;;  %v86_v31 = vshrl.u32 %v85_v28, 7  ;;  %s582_s18 = sshll.u32 %s675_s17, 4  ;;  %s583_s18 = int_to_ptr.vmem [resolvable:$true] %s582_s18 }
   0xb   :  { %61 = vperm.xlu0 %636, %v31_v5   ;;  %180 = vperm.xlu1 %638, %v29_v4   ;;  %v34_v13 = vld [vmem:[%s900_s1 + $0x30] sm:$0xff]  ;;  %v41_v15 = vld [vmem:[%s901_s2 + $0x28] sm:$0xff]  ;;  %v43_v17 = vld [vmem:[%s901_s2 + $0x38] sm:$0xff]  ;;  %s648_s19 = scalar_lea.vmem %s583_s18, 64  ;;  %p653_p1 = scmp.lt.s32.totalorder %s583_s18, %s583_s18 }
   0xc   :  { %v42_v16 = vld [vmem:[%s901_s2 + $0x30] sm:$0xff]  ;;  %v281_v19 = vld [vmem:[%s903_s4] sm:$0xff]  ;;  %v282_v20 = vld [vmem:[%s903_s4 + $0x8] sm:$0xff]  ;;  %v87_v34 = vsub.s32 0, %v86_v31  ;;  %v91_v35 = vsub.s32 2, %v86_v31  ;;  %v209_v37 = vsub.s32 1, %v86_v31  ;;  %p649_p0 = scmp.ne.s32.totalorder %s583_s18, %s648_s19  ;;  %p654_p2 = scmp.lt.s32.totalorder %s648_s19, %s648_s19 }
   0xd   :  { %v283_v21 = vld [vmem:[%s903_s4 + $0x10] sm:$0xff]  ;;  %v285_v22 = vld [vmem:[%s903_s4 + $0x20] sm:$0xff]  ;;  %v284_v23 = vld [vmem:[%s903_s4 + $0x18] sm:$0xff]  ;;  %v213_v38 = vsub.s32 3, %v86_v31 }
   0xe   :  { %v287_v24 = vld [vmem:[%s903_s4 + $0x30] sm:$0xff]  ;;  %v286_v25 = vld [vmem:[%s903_s4 + $0x28] sm:$0xff]  ;;  %v484_v26 = vld [vmem:[%s905_s6] sm:$0x3]  ;;  %p655_p3 = por %p654_p2, %p653_p1 }
   0xf   :  { %71 = vperm.xlu0 %636, %v33_v7   ;;  %639 = vset.pattern.permute.xlu1 %v672_v2  ;;  %v288_v27 = vld [vmem:[%s903_s4 + $0x38] sm:$0xff]  ;;  %v27_v36 = vld [vmem:[%s899_s0] sm:$0xf] }
  0x10   :  { %56 = vperm.xlu1 %639, %v30_v8   ;;  %v88_v40 = vrot.slane %v27_v36, %v87_v34  ;;  %v92_v41 = vrot.slane %v27_v36, %v91_v35  ;;  %v210_v43 = vrot.slane %v27_v36, %v209_v37  ;;  %v214_v44 = vrot.slane %v27_v36, %v213_v38  ;;  %p656_p4 = pnand %p655_p3, %p649_p0 }
  0x12   :  { %v798_v46 = vrot.slane %v88_v40, %v87_v34  ;;  %v800_v47 = vrot.slane %v92_v41, %v87_v34  ;;  %v802_v49 = vrot.slane %v210_v43, %v209_v37  ;;  %v804_v50 = vrot.slane %v214_v44, %v209_v37 }
  0x13   :  { %81 = vperm.xlu0 %636, %v35_v9  }
  0x14   :  { %131 = vperm.xlu1 %639, %v38_v10  }
  0x17   :  { %644 = vset.pattern.permute.xlu0 %v673_v6 }
  0x18   :  { %176 = vperm.xlu0 %644, %v28_v1   ;;  %136 = vperm.xlu1 %639, %v39_v11  }
  0x1c   :  { %184 = vperm.xlu0 %644, %v30_v8   ;;  %640 = vset.pattern.permute.xlu1 %v673_v6 }
  0x1d   :  { %188 = vperm.xlu1 %640, %v31_v5  }
  0x20   :  { %192 = vperm.xlu0 %644, %v32_v12  }
  0x21   :  { %641 = vset.pattern.permute.xlu1 %v672_v2 }
  0x22   :  { %66 = vperm.xlu1 %641, %v32_v12  }
  0x24   :  { %200 = vperm.xlu0 %644, %v34_v13  }
  0x26   :  { %141 = vperm.xlu1 %641, %v40_v14  }
  0x28   :  { %647 = vset.pattern.permute.xlu0 %v672_v2 }
  0x29   :  { %296 = vperm.xlu0 %647, %v282_v20  }
  0x2a   :  { %146 = vperm.xlu1 %641, %v41_v15  }
  0x2d   :  { %311 = vperm.xlu0 %647, %v285_v22  }
  0x2e   :  { %642 = vset.pattern.permute.xlu1 %v673_v6 }
  0x2f   :  { %196 = vperm.xlu1 %642, %v33_v7  }
  0x31   :  { %321 = vperm.xlu0 %647, %v287_v24  }
  0x33   :  { %643 = vset.pattern.permute.xlu1 %v672_v2 }
  0x34   :  { %76 = vperm.xlu1 %643, %v34_v13  }
  0x35   :  { %487 = vperm.xlu0 %647, %v484_v26  }
  0x38   :  { %151 = vperm.xlu1 %643, %v42_v16  }
  0x3c   :  { %156 = vperm.xlu1 %643, %v43_v17  }
  0x40   :  { %645 = vset.pattern.permute.xlu1 %v673_v6 }
  0x41   :  { %204 = vperm.xlu1 %645, %v35_v9  }
  0x45   :  { %646 = vset.pattern.permute.xlu1 %v672_v2 }
  0x46   :  { %291 = vperm.xlu1 %646, %v281_v19  }
  0x4a   :  { %301 = vperm.xlu1 %646, %v283_v21  }
  0x4e   :  { %306 = vperm.xlu1 %646, %v284_v23  }
  0x52   :  { %316 = vperm.xlu1 %646, %v286_v25  }
  0x56   :  { %326 = vperm.xlu1 %646, %v288_v27  }
  0x81   :  { %v122_v29 = vpop.permute.xlu1 %121 }
  0x82   :  { %v47_v30 = vpop.permute.xlu0 %46 }
  0x83   :  { %v103_v52 = vmul.f32 %v798_v46, %v47_v30  ;;  %v104_v53 = vmul.f32 %v800_v47, %v47_v30 }
  0x85   :  { %v127_v32 = vpop.permute.xlu1 %126  ;;  %v159_v59 = vadd.f32 %v122_v29, %v103_v52  ;;  %v160_v60 = vadd.f32 %v122_v29, %v104_v53 }
  0x86   :  { %v52_v33 = vpop.permute.xlu0 %51 }
  0x87   :  { %v105_v54 = vmul.f32 %v798_v46, %v52_v33  ;;  %v106_v55 = vmul.f32 %v800_v47, %v52_v33 }
  0x89   :  { %v161_v61 = vadd.f32 %v127_v32, %v105_v54  ;;  %v162_v62 = vadd.f32 %v127_v32, %v106_v55 }
  0x8a   :  { %v62_v39 = vpop.permute.xlu0 %61  ;;  %v181_v42 = vpop.permute.xlu1 %180 }
  0x8b   :  { %v227_v57 = vmul.f32 %v802_v49, %v181_v42  ;;  %v228_v58 = vmul.f32 %v804_v50, %v181_v42  ;;  %v109_v0 = vmul.f32 %v798_v46, %v62_v39  ;;  %v110_v1 = vmul.f32 %v800_v47, %v62_v39 }
  0x8d   :  { %v243_v5 = vadd.f32 %v227_v57, %v161_v61  ;;  %v244_v8 = vadd.f32 %v228_v58, %v162_v62 }
  0x8e   :  { %v796_v45 = vpop.permute.xlu0 %71 }
  0x8f   :  { %v57_v48 = vpop.permute.xlu1 %56  ;;  %v260_v22 = vmax.f32 %v244_v8, 0.0  ;;  %v259_v23 = vmax.f32 %v243_v5, 0.0  ;;  %v113_v54 = vmul.f32 %v798_v46, %v796_v45  ;;  %v114_v55 = vmul.f32 %v800_v47, %v796_v45 }
  0x90   :  { %v107_v6 = vmul.f32 %v798_v46, %v57_v48  ;;  %v108_v7 = vmul.f32 %v800_v47, %v57_v48 }
  0x92   :  { %v806_v51 = vpop.permute.xlu0 %81 }
  0x93   :  { %v132_v56 = vpop.permute.xlu1 %131 }
  0x94   :  { %v163_v11 = vadd.f32 %v132_v56, %v107_v6  ;;  %v164_v12 = vadd.f32 %v132_v56, %v108_v7 }
  0x97   :  { %v177_v63 = vpop.permute.xlu0 %176  ;;  %v137_v4 = vpop.permute.xlu1 %136 }
  0x98   :  { %v225_v2 = vmul.f32 %v802_v49, %v177_v63  ;;  %v226_v3 = vmul.f32 %v804_v50, %v177_v63  ;;  %v165_v19 = vadd.f32 %v137_v4, %v109_v0  ;;  %v166_v20 = vadd.f32 %v137_v4, %v110_v1 }
  0x9a   :  { %v241_v9 = vadd.f32 %v225_v2, %v159_v59  ;;  %v242_v10 = vadd.f32 %v226_v3, %v160_v60 }
  0x9b   :  { %v185_v13 = vpop.permute.xlu0 %184 }
  0x9c   :  { %v229_v14 = vmul.f32 %v802_v49, %v185_v13  ;;  %v230_v15 = vmul.f32 %v804_v50, %v185_v13  ;;  %v258_v16 = vmax.f32 %v242_v10, 0.0  ;;  %v257_v17 = vmax.f32 %v241_v9, 0.0  ;;  %v189_v21 = vpop.permute.xlu1 %188 }
  0x9d   :  { %v231_v26 = vmul.f32 %v802_v49, %v189_v21  ;;  %v232_v27 = vmul.f32 %v804_v50, %v189_v21 }
  0x9e   :  { %v245_v24 = vadd.f32 %v229_v14, %v163_v11  ;;  %v246_v25 = vadd.f32 %v230_v15, %v164_v12  ;;  %v600_v28 = vpack.c.bf16 %v260_v22, %v258_v16  ;;  %v602_v29 = vpack.c.bf16 %v259_v23, %v257_v17 }
  0x9f   :  { %v247_v30 = vadd.f32 %v231_v26, %v165_v19  ;;  %v248_v31 = vadd.f32 %v232_v27, %v166_v20  ;;  %v193_v40 = vpop.permute.xlu0 %192  ;;  %v117_v16 = vmul.f32 %v798_v46, %v806_v51  ;;  %v118_v17 = vmul.f32 %v800_v47, %v806_v51  ;;  %v276_v51 = vld [vmem:[%s902_s3 + $0x18] sm:$0xff] }
  0xa0   :  { %601 = vmatprep.subr.bf16.mxu0 %v600_v28  ;;  %v261_v32 = vmax.f32 %v245_v24, 0.0  ;;  %v262_v33 = vmax.f32 %v246_v25, 0.0  ;;  %v233_v52 = vmul.f32 %v802_v49, %v193_v40  ;;  %v234_v53 = vmul.f32 %v804_v50, %v193_v40 }
  0xa1   :  { %v263_v34 = vmax.f32 %v247_v30, 0.0  ;;  %v264_v35 = vmax.f32 %v248_v31, 0.0  ;;  %603 = vmatpush1.bf16.msra.mxu0 %v602_v29  ;;  %v67_v36 = vpop.permute.xlu1 %66 }
  0xa2   :  { %v111_v41 = vmul.f32 %v798_v46, %v67_v36  ;;  %v112_v42 = vmul.f32 %v800_v47, %v67_v36  ;;  %v280_v36 = vld [vmem:[%s902_s3 + $0x38] sm:$0xff] }
  0xa3   :  { %v604_v37 = vpack.c.bf16 %v264_v35, %v262_v33  ;;  %v606_v38 = vpack.c.bf16 %v263_v34, %v261_v32  ;;  %v201_v10 = vpop.permute.xlu0 %200  ;;  %v277_v33 = vld [vmem:[%s902_s3 + $0x20] sm:$0xff]  ;;  %v278_v34 = vld [vmem:[%s902_s3 + $0x28] sm:$0xff]  ;;  %v279_v35 = vld [vmem:[%s902_s3 + $0x30] sm:$0xff] }
  0xa4   :  { %v237_v14 = vmul.f32 %v802_v49, %v201_v10  ;;  %v238_v15 = vmul.f32 %v804_v50, %v201_v10 }
  0xa5   :  { %v142_v39 = vpop.permute.xlu1 %141  ;;  %605 = vmatprep.subr.bf16.mxu0 %v604_v37 }
  0xa6   :  { %607 = vmatpush1.bf16.msra.mxu0 %v606_v38  ;;  %v167_v44 = vadd.f32 %v142_v39, %v111_v41  ;;  %v168_v48 = vadd.f32 %v142_v39, %v112_v42 }
  0xa8   :  { %v249_v56 = vadd.f32 %v233_v52, %v167_v44  ;;  %v250_v57 = vadd.f32 %v234_v53, %v168_v48  ;;  %v297_v40 = vpop.permute.xlu0 %296 }
  0xa9   :  { %v147_v43 = vpop.permute.xlu1 %146 }
  0xaa   :  { %v169_v59 = vadd.f32 %v147_v43, %v113_v54  ;;  %v170_v60 = vadd.f32 %v147_v43, %v114_v55  ;;  %v265_v1 = vmax.f32 %v249_v56, 0.0  ;;  %v266_v2 = vmax.f32 %v250_v57, 0.0 }
  0xac   :  { %v312_v10 = vpop.permute.xlu0 %311 }
  0xae   :  { %v197_v58 = vpop.permute.xlu1 %196 }
  0xaf   :  { %v235_v61 = vmul.f32 %v802_v49, %v197_v58  ;;  %v236_v62 = vmul.f32 %v804_v50, %v197_v58 }
  0xb1   :  { %v251_v63 = vadd.f32 %v235_v61, %v169_v59  ;;  %v252_v0 = vadd.f32 %v236_v62, %v170_v60 }
  0xb3   :  { %v267_v3 = vmax.f32 %v251_v63, 0.0  ;;  %v268_v4 = vmax.f32 %v252_v0, 0.0  ;;  %v77_v5 = vpop.permute.xlu1 %76 }
  0xb4   :  { %v115_v45 = vmul.f32 %v798_v46, %v77_v5  ;;  %v116_v9 = vmul.f32 %v800_v47, %v77_v5  ;;  %v273_v47 = vld [vmem:[%s902_s3] sm:$0xff] }
  0xb5   :  { %v608_v6 = vpack.c.bf16 %v268_v4, %v266_v2  ;;  %v610_v7 = vpack.c.bf16 %v267_v3, %v265_v1 }
  0xb7   :  { %v152_v8 = vpop.permute.xlu1 %151  ;;  %609 = vmatprep.subr.bf16.mxu0 %v608_v6 }
  0xb8   :  { %611 = vmatpush1.bf16.msra.mxu0 %v610_v7  ;;  %v171_v12 = vadd.f32 %v152_v8, %v115_v45  ;;  %v172_v13 = vadd.f32 %v152_v8, %v116_v9 }
  0xba   :  { %v253_v19 = vadd.f32 %v237_v14, %v171_v12  ;;  %v254_v20 = vadd.f32 %v238_v15, %v172_v13 }
  0xbb   :  { %v157_v11 = vpop.permute.xlu1 %156 }
  0xbc   :  { %v173_v22 = vadd.f32 %v157_v11, %v117_v16  ;;  %v174_v23 = vadd.f32 %v157_v11, %v118_v17  ;;  %v269_v28 = vmax.f32 %v253_v19, 0.0  ;;  %v270_v29 = vmax.f32 %v254_v20, 0.0 }
  0xc0   :  { %v205_v21 = vpop.permute.xlu1 %204 }
  0xc1   :  { %v239_v24 = vmul.f32 %v802_v49, %v205_v21  ;;  %v240_v25 = vmul.f32 %v804_v50, %v205_v21  ;;  %v274_v49 = vld [vmem:[%s902_s3 + $0x8] sm:$0xff]  ;;  %v275_v50 = vld [vmem:[%s902_s3 + $0x10] sm:$0xff] }
  0xc3   :  { %v255_v26 = vadd.f32 %v239_v24, %v173_v22  ;;  %v256_v27 = vadd.f32 %v240_v25, %v174_v23 }
  0xc5   :  { %v271_v30 = vmax.f32 %v255_v26, 0.0  ;;  %v272_v31 = vmax.f32 %v256_v27, 0.0  ;;  %v292_v37 = vpop.permute.xlu1 %291  ;;  %v322_v27 = vpop.permute.xlu0 %321 }
  0xc7   :  { %v612_v32 = vpack.c.bf16 %v272_v31, %v270_v29  ;;  %v614_v46 = vpack.c.bf16 %v271_v30, %v269_v28 }
  0xc9   :  { %613 = vmatprep.subr.bf16.mxu0 %v612_v32  ;;  %v302_v52 = vpop.permute.xlu1 %301 }
  0xca   :  { %615 = vmatpush1.bf16.msra.mxu0 %v614_v46 }
  0xcd   :  { %590 = vmatmul.mubr.msk.f32.vlgmr.msra.gmra.mrb[0].mxu0 %vm329_vm0, %v273_v47  ;;  %v307_v62 = vpop.permute.xlu1 %306 }
  0xce   :  { %424 = vmatprep.mubr.f32.mxu0 %v674_v18 }
  0xd1   :  { %591 = vmatmul.mubr.msk.f32.gmra.mrb[2].mxu0 %vm329_vm0, %v274_v49  ;;  %v317_v13 = vpop.permute.xlu1 %316 }
  0xd2   :  { %430 = vmatprep.mubr.f32.mxu0 %v674_v18 }
  0xd5   :  { %592 = vmatmul.mubr.msk.f32.gmra.mrb[4].mxu0 %vm329_vm0, %v275_v50  ;;  %v327_v30 = vpop.permute.xlu1 %326 }
  0xd6   :  { %436 = vmatprep.mubr.f32.mxu0 %v674_v18 }
  0xd9   :  { %593 = vmatmul.mubr.msk.f32.gmra.mrb[6].mxu0 %vm329_vm0, %v276_v51 }
  0xda   :  { %442 = vmatprep.mubr.f32.mxu0 %v674_v18 }
  0xdd   :  { %594 = vmatmul.mubr.msk.f32.gmra.mrb[8].mxu0 %vm329_vm0, %v277_v33 }
  0xde   :  { %448 = vmatprep.mubr.f32.mxu0 %v674_v18 }
  0xe1   :  { %595 = vmatmul.mubr.msk.f32.gmra.mrb[10].mxu0 %vm329_vm0, %v278_v34 }
  0xe2   :  { %454 = vmatprep.mubr.f32.mxu0 %v674_v18 }
  0xe5   :  { %596 = vmatmul.mubr.msk.f32.gmra.mrb[12].mxu0 %vm329_vm0, %v279_v35 }
  0xe6   :  { %460 = vmatprep.mubr.f32.mxu0 %v674_v18 }
  0xe9   :  { %597 = vmatmul.mubr.msk.f32.gmra.mrb[14].mxu0 %vm329_vm0, %v280_v36 }
 0x1a0   :  { %v420_v38 = vpop.f32.mrb[0].mxu0 }
 0x1a1   :  { %v422_v39 = vpop.f32.mrb[1].mxu0  ;;  %v421_v41 = vadd.f32 %v420_v38, %v292_v37  ;;  %v488_v38 = vpop.permute.xlu0 %487 }
 0x1a2   :  { %v423_v42 = vadd.f32 %v422_v39, %v292_v37  ;;  %v483_v37 = vld [vmem:[%s904_s5] sm:$0x3] }
 0x1a3   :  { %v467_v54 = vmax.f32 %v421_v41, 0.0 }
 0x1a4   :  { %v426_v43 = vpop.f32.mrb[2].mxu0  ;;  %v468_v18 = vmax.f32 %v423_v42, 0.0 }
 0x1a5   :  { %v427_v44 = vadd.f32 %v426_v43, %v297_v40  ;;  %v428_v48 = vpop.f32.mrb[3].mxu0 }
 0x1a6   :  { %v429_v53 = vadd.f32 %v428_v48, %v297_v40 }
 0x1a7   :  { %v469_v55 = vmax.f32 %v427_v44, 0.0 }
 0x1a8   :  { %v470_v56 = vmax.f32 %v429_v53, 0.0  ;;  %v432_v57 = vpop.f32.mrb[4].mxu0 }
 0x1a9   :  { %v434_v58 = vpop.f32.mrb[5].mxu0  ;;  %v618_v59 = vpack.c.bf16 %v469_v55, %v467_v54  ;;  %v433_v61 = vadd.f32 %v432_v57, %v302_v52 }
 0x1aa   :  { %v616_v60 = vpack.c.bf16 %v470_v56, %v468_v18  ;;  %v435_v63 = vadd.f32 %v434_v58, %v302_v52 }
 0x1ab   :  { %v471_v4 = vmax.f32 %v433_v61, 0.0 }
 0x1ac   :  { %v438_v0 = vpop.f32.mrb[6].mxu0  ;;  %617 = vmatprep.subr.bf16.mxu1 %v616_v60  ;;  %v472_v6 = vmax.f32 %v435_v63, 0.0 }
 0x1ad   :  { %v439_v1 = vadd.f32 %v438_v0, %v307_v62  ;;  %v440_v2 = vpop.f32.mrb[7].mxu0  ;;  %619 = vmatpush1.bf16.msra.mxu1 %v618_v59 }
 0x1ae   :  { %v441_v3 = vadd.f32 %v440_v2, %v307_v62 }
 0x1af   :  { %v473_v5 = vmax.f32 %v439_v1, 0.0 }
 0x1b0   :  { %v474_v7 = vmax.f32 %v441_v3, 0.0  ;;  %v444_v8 = vpop.f32.mrb[8].mxu0 }
 0x1b1   :  { %v622_v45 = vpack.c.bf16 %v473_v5, %v471_v4  ;;  %v446_v9 = vpop.f32.mrb[9].mxu0  ;;  %v445_v12 = vadd.f32 %v444_v8, %v312_v10 }
 0x1b2   :  { %v620_v11 = vpack.c.bf16 %v474_v7, %v472_v6  ;;  %v447_v14 = vadd.f32 %v446_v9, %v312_v10 }
 0x1b3   :  { %v475_v20 = vmax.f32 %v445_v12, 0.0 }
 0x1b4   :  { %v450_v15 = vpop.f32.mrb[10].mxu0  ;;  %621 = vmatprep.subr.bf16.mxu1 %v620_v11  ;;  %v476_v22 = vmax.f32 %v447_v14, 0.0 }
 0x1b5   :  { %v451_v16 = vadd.f32 %v450_v15, %v317_v13  ;;  %v452_v17 = vpop.f32.mrb[11].mxu0  ;;  %623 = vmatpush1.bf16.msra.mxu1 %v622_v45 }
 0x1b6   :  { %v453_v19 = vadd.f32 %v452_v17, %v317_v13 }
 0x1b7   :  { %v477_v21 = vmax.f32 %v451_v16, 0.0 }
 0x1b8   :  { %v478_v23 = vmax.f32 %v453_v19, 0.0  ;;  %v456_v24 = vpop.f32.mrb[12].mxu0 }
 0x1b9   :  { %v626_v25 = vpack.c.bf16 %v477_v21, %v475_v20  ;;  %v458_v26 = vpop.f32.mrb[13].mxu0  ;;  %v457_v29 = vadd.f32 %v456_v24, %v322_v27 }
 0x1ba   :  { %v624_v28 = vpack.c.bf16 %v478_v23, %v476_v22  ;;  %v459_v31 = vadd.f32 %v458_v26, %v322_v27 }
 0x1bb   :  { %v479_v50 = vmax.f32 %v457_v29, 0.0 }
 0x1bc   :  { %v462_v32 = vpop.f32.mrb[14].mxu0  ;;  %625 = vmatprep.subr.bf16.mxu1 %v624_v28  ;;  %v480_v33 = vmax.f32 %v459_v31, 0.0 }
 0x1bd   :  { %v463_v46 = vadd.f32 %v462_v32, %v327_v30  ;;  %v464_v47 = vpop.f32.mrb[15].mxu0  ;;  %627 = vmatpush1.bf16.msra.mxu1 %v626_v25 }
 0x1be   :  { %v465_v49 = vadd.f32 %v464_v47, %v327_v30 }
 0x1bf   :  { %v481_v51 = vmax.f32 %v463_v46, 0.0 }
 0x1c0   :  { %v482_v34 = vmax.f32 %v465_v49, 0.0 }
 0x1c1   :  { %v630_v35 = vpack.c.bf16 %v481_v51, %v479_v50 }
 0x1c2   :  { %v628_v36 = vpack.c.bf16 %v482_v34, %v480_v33 }
 0x1c4   :  { %629 = vmatprep.subr.bf16.mxu1 %v628_v36 }
 0x1c5   :  { %631 = vmatpush1.bf16.msra.mxu1 %v630_v35 }
 0x1c8   :  { %598 = vmatmul.mubr.msk.f32.vlgmr.msra.gmra.mrb[0].mxu1 %vm329_vm0, %v483_v37 }
 0x29b   :  { %v559_v39 = vpop.f32.mrb[0].mxu1 }
 0x29c   :  { %v560_v40 = vadd.f32 %v559_v39, %v488_v38  ;;  %v561_v41 = vpop.f32.mrb[1].mxu1 }
 0x29d   :  { %v562_v42 = vadd.f32 %v561_v41, %v488_v38 }
 0x29f   :  { %v566_v43 = vcombine.low %v560_v40, %v562_v42 }
 0x2a1   :  { %599 = vst.sshfl [vmem:[#allocation2] sm:$0x33 pattern:$0x76325410] %v566_v43 }
 0x2a2   :  { %659 = shalt.err (!%p656_p4)
}
 0x2a3   :  { %s660_s21 = scalar_lea.hbm %s906_s7, 64 }
 0x2a4   :  { %p661_p5 = scmp.ne.s32.totalorder %s906_s7, %s660_s21  ;;  %p664_p6 = scmp.lt.u32.totalorder %s660_s21, %s906_s7 }
 0x2a6   :  { %p666_p7 = pnand %p664_p6, %p661_p5 }
 0x2a8   :  { %669 = shalt.err (!%p666_p7)
}
 0x2a9   :  { %585 = dma.vmem_to_hbm [thread:$0]  %s583_s18, 64, %s906_s7, [#allocation3]  }
 0x2aa   :  { %670 = dma.done.wait [#allocation3], 64  }
 0x2ab   :  { %671 = vsyncadd [#allocation3], 4294967232 }
 0x2ac   :  { %589 = vsyncpa [#allocation3], 1 }

</bundles_post_ra>
